<compile_context>
chip_gen: v7x
topology: tpu7x:2x2x1
jax: 0.10.0
libtpu: 0.0.40
codegen_flags: <defaults>
</compile_context>

<pallas_src>
import functools

import jax
import jax.numpy as jnp
from jax import lax
from jax.experimental import pallas as pl
from jax.experimental.pallas import tpu as pltpu


def _cdiv(a, b):
    return -(-a // b)


def _gdsconv_block_kernel(xl_ref, xm_ref, xr_ref, w1_ref, w2_ref,
                          scale_ref, shift_ref, pool_ref, o_ref, *,
                          K, dilation, s, D, B2, P, L, L2, padP, use_bf16_mxu):
    """One (batch element, pooled-output tile) per grid step.

    xl_ref : (C_in, 128)    x columns [t*Bx-128, t*Bx)          (left halo)
    xm_ref : (C_in, Bx)     x columns [t*Bx, (t+1)*Bx)          (main block)
    xr_ref : (C_in, 128)    x columns [(t+1)*Bx, (t+1)*Bx+128)  (right halo)
    w1_ref : (C_in, K)      depthwise taps
    w2_ref : (C_out, C_in)  block-diagonal grouped 1x1 weights
    scale_ref, shift_ref : (C_out, 1) folded eval-mode BatchNorm affine
    pool_ref : (B2, TP)     0/1 average-pooling matrix
    o_ref  : (C_out, TP)    pooled output tile
    """
    t = pl.program_id(1)
    Bx = B2 * s
    C_in = w1_ref.shape[0]

    # --- assemble the halo'd input window (all pieces are 128-aligned) ------
    xw = jnp.concatenate([xl_ref[...], xm_ref[...], xr_ref[...]], axis=-1)
    W = 128 + Bx + 128
    # column c of xw holds x[:, t*Bx - 128 + c]; zero anything outside [0, L)
    pos = t * Bx - 128 + lax.broadcasted_iota(jnp.int32, (1, W), 1)
    xw = jnp.where((pos >= 0) & (pos < L), xw.astype(jnp.float32), 0.0)

    # --- depthwise conv, evaluated only at the subsampled output columns ----
    w1 = w1_ref[...].astype(jnp.float32)          # single (C_in, K) load
    acc = jnp.zeros((C_in, B2), jnp.float32)
    base = 128 - D                                # window start for column j2 == 0
    for k in range(K):                            # K is small; unrolled at trace time
        start = base + k * dilation
        if s == 1:
            win = xw[:, start:start + B2]
        else:
            # combined stride*pcstride subsampling pushed into the input read
            win = lax.slice(xw, (0, start), (C_in, start + (B2 - 1) * s + 1), (1, s))
        acc = acc + w1[:, k:k + 1] * win

    # --- grouped 1x1 conv as ONE block-diagonal matmul on the MXU -----------
    # (for very small C_in//groups a VPU broadcast-MAC would also do; a single
    #  dense dot keeps one MXU pass and one dense output slab)
    if use_bf16_mxu:
        y = jnp.dot(w2_ref[...].astype(jnp.bfloat16), acc.astype(jnp.bfloat16),
                    preferred_element_type=jnp.float32)
    else:
        y = jnp.dot(w2_ref[...], acc, preferred_element_type=jnp.float32)

    # --- ReLU + BatchNorm1d (eval-mode per-channel affine) ------------------
    y = jnp.maximum(y, 0.0)
    y = y * scale_ref[...] + shift_ref[...]

    # columns outside [0, L2) are AvgPool zero-padding (count_include_pad=True)
    q = t * B2 - padP + lax.broadcasted_iota(jnp.int32, (1, B2), 1)
    y = jnp.where((q >= 0) & (q < L2), y, 0.0)

    # --- AvgPool1d(P, stride=P, padding=P//2) as a matmul --------------------
    pooled = jnp.dot(y, pool_ref[...], preferred_element_type=jnp.float32)
    pooled = pooled * (1.0 / P)

    # Dropout is the identity at inference time; single dense lane-wide store.
    o_ref[...] = pooled.astype(o_ref.dtype)


def gdsconv_block(x, w1, w2, bn_gamma, bn_beta, bn_mean, bn_var, *,
                  kernel_size, stride, pcstride, groups, avg_pool_len,
                  padding=None, dilation=1, bn_eps=1e-5, use_bf16_mxu=False):
    """GDSConvBlock forward (inference semantics).

    x  : (N, C_in, L) float32
    w1 : (C_in, 1, K)          PyTorch depthwise Conv1d weight
    w2 : (C_out, C_in//G, 1)   PyTorch grouped 1x1 Conv1d weight
    bn_*: (C_out,)             BatchNorm1d gamma/beta/running_mean/running_var
    """
    N, C_in, L = x.shape
    C_out = w2.shape[0]
    K, G, P = kernel_size, groups, avg_pool_len
    if padding is None:
        padding = K // 2                      # GDSConvBlock uses kernel_size // 2
    assert C_in % G == 0 and C_out % G == 0

    s = stride * pcstride                     # combined subsampling of both convs
    span = dilation * (K - 1)
    L1 = (L + 2 * padding - span - 1) // stride + 1   # depthwise output length
    L2 = (L1 - 1) // pcstride + 1                     # pointwise output length
    padP = P // 2
    L3 = (L2 + 2 * padP - P) // P + 1                 # pooled output length
    assert L1 > 0 and L2 > 0 and L3 > 0

    D = padP * s + padding                    # left reach of the fused window
    H = max(span - (s - 1), 0)                # right halo past the main block
    if D > 128 or H > 128:
        # TODO(synk): widen the halo slivers to multiple 128-blocks for very
        # large dilation / pool sizes; not needed for this model's configs.
        raise NotImplementedError("halo wider than 128 columns not supported")

    # Tile the pooled output: TP pooled columns (multiple of 128) per step,
    # i.e. B2 = TP*P conv columns and Bx = B2*s input columns per step.
    tp_mult = max(1, 512 // (128 * P * s))    # target ~512 input columns / step
    tp_mult = min(tp_mult, max(1, _cdiv(L3, 128)))
    TP = 128 * tp_mult
    B2 = TP * P
    Bx = B2 * s
    num_tiles = _cdiv(L3, TP)

    # --- tiny host-side parameter prep (no copies of x) ---------------------
    w1_k = w1.reshape(C_in, K).astype(jnp.float32)
    Cig, Cog = C_in // G, C_out // G
    w2_m = w2.reshape(C_out, Cig).astype(jnp.float32)
    w2_bd = jnp.zeros((C_out, C_in), jnp.float32)       # block-diagonal packing
    for g in range(G):
        w2_bd = w2_bd.at[g * Cog:(g + 1) * Cog, g * Cig:(g + 1) * Cig].set(
            w2_m[g * Cog:(g + 1) * Cog])
    a = bn_gamma.astype(jnp.float32) / jnp.sqrt(bn_var.astype(jnp.float32) + bn_eps)
    b = bn_beta.astype(jnp.float32) - bn_mean.astype(jnp.float32) * a
    scale = a.reshape(C_out, 1)
    shift = b.reshape(C_out, 1)
    pool_mat = (jnp.arange(B2)[:, None] // P ==
                jnp.arange(TP)[None, :]).astype(jnp.float32)

    nb128 = _cdiv(L, 128)                     # number of 128-wide x blocks
    nbBx = _cdiv(L, Bx)                       # number of Bx-wide x blocks

    def xl_map(n, t):   # 128 columns ending at t*Bx (conv + pool left padding)
        return (n, 0, jnp.maximum(jnp.minimum(t * (Bx // 128) - 1, nb128 - 1), 0))

    def xm_map(n, t):   # main Bx-wide block
        return (n, 0, jnp.minimum(t, nbBx - 1))

    def xr_map(n, t):   # 128 columns starting at (t+1)*Bx (right depthwise halo)
        return (n, 0, jnp.minimum((t + 1) * (Bx // 128), nb128 - 1))

    kernel = functools.partial(
        _gdsconv_block_kernel, K=K, dilation=dilation, s=s, D=D, B2=B2, P=P,
        L=L, L2=L2, padP=padP, use_bf16_mxu=use_bf16_mxu)

    # VMEM budget: double-buffered x tiles + resident weights / pool matrix +
    # double-buffered output tiles + working values; cap below v7x's 64 MiB.
    est = 4 * (2 * C_in * (Bx + 256) + 2 * C_out * TP + C_in * K
               + C_out * C_in + 2 * C_out + B2 * TP + (C_in + C_out) * B2)
    vmem_limit = int(min(48 * 2 ** 20, max(32 * 2 ** 20, 4 * est)))

    return pl.pallas_call(
        kernel,
        out_shape=jax.ShapeDtypeStruct((N, C_out, L3), jnp.float32),
        grid_spec=pltpu.PrefetchScalarGridSpec(
            num_scalar_prefetch=0,
            grid=(N, num_tiles),
            in_specs=[
                pl.BlockSpec((None, C_in, 128), xl_map),
                pl.BlockSpec((None, C_in, Bx), xm_map),
                pl.BlockSpec((None, C_in, 128), xr_map),
                pl.BlockSpec((C_in, K), lambda n, t: (0, 0)),
                pl.BlockSpec((C_out, C_in), lambda n, t: (0, 0)),
                pl.BlockSpec((C_out, 1), lambda n, t: (0, 0)),
                pl.BlockSpec((C_out, 1), lambda n, t: (0, 0)),
                pl.BlockSpec((B2, TP), lambda n, t: (0, 0)),
            ],
            out_specs=pl.BlockSpec((None, C_out, TP), lambda n, t: (n, 0, t)),
        ),
        compiler_params=pltpu.CompilerParams(
            dimension_semantics=("parallel", "parallel"),
            vmem_limit_bytes=vmem_limit),
    )(x, x, x, w1_k, w2_bd, scale, shift, pool_mat)


def gdsconv_block_reference(x, w1, w2, bn_gamma, bn_beta, bn_mean, bn_var, *,
                            stride, pcstride, groups, avg_pool_len,
                            padding, dilation, bn_eps=1e-5):
    """Pure-JAX reference mirroring the PyTorch block (inference semantics)."""
    hi = lax.Precision.HIGHEST
    y = lax.conv_general_dilated(
        x, w1, window_strides=(stride,), padding=[(padding, padding)],
        rhs_dilation=(dilation,), dimension_numbers=("NCH", "OIH", "NCH"),
        feature_group_count=x.shape[1], precision=hi)
    y = lax.conv_general_dilated(
        y, w2, window_strides=(pcstride,), padding=[(0, 0)],
        dimension_numbers=("NCH", "OIH", "NCH"),
        feature_group_count=groups, precision=hi)
    y = jnp.maximum(y, 0.0)
    a = bn_gamma / jnp.sqrt(bn_var + bn_eps)
    b = bn_beta - bn_mean * a
    y = y * a[None, :, None] + b[None, :, None]
    P = avg_pool_len
    padP = P // 2
    y = lax.reduce_window(y, 0.0, lax.add, (1, 1, P), (1, 1, P),
                          [(0, 0), (0, 0), (padP, padP)]) / P
    # Dropout: identity at inference.
    return y


if __name__ == "__main__":
    key = jax.random.PRNGKey(0)

    def make_case(k, N, C_in, C_out, K, G, L):
        kx, k1, k2, kg, kb, km, kv = jax.random.split(k, 7)
        x = jax.random.normal(kx, (N, C_in, L), dtype=jnp.float32)
        w1 = jax.random.normal(k1, (C_in, 1, K), dtype=jnp.float32) * 0.3
        w2 = jax.random.normal(k2, (C_out, C_in // G, 1), dtype=jnp.float32) * 0.3
        gamma = 1.0 + 0.2 * jax.random.normal(kg, (C_out,), dtype=jnp.float32)
        beta = 0.1 * jax.random.normal(kb, (C_out,), dtype=jnp.float32)
        mean = 0.05 * jax.random.normal(km, (C_out,), dtype=jnp.float32)
        var = 0.5 + jax.random.uniform(kv, (C_out,), dtype=jnp.float32)
        return x, w1, w2, gamma, beta, mean, var

    def check(name, cfg, k, use_bf16=False, atol=2e-5, rtol=2e-5):
        (N, C_in, C_out, K, stride, pcstride, G, P, L) = cfg
        x, w1, w2, g_, b_, m_, v_ = make_case(k, N, C_in, C_out, K, G, L)
        padding = K // 2
        out = gdsconv_block(x, w1, w2, g_, b_, m_, v_,
                            kernel_size=K, stride=stride, pcstride=pcstride,
                            groups=G, avg_pool_len=P, padding=padding,
                            dilation=1, use_bf16_mxu=use_bf16)
        out = jax.block_until_ready(out)
        ref = gdsconv_block_reference(x, w1, w2, g_, b_, m_, v_,
                                      stride=stride, pcstride=pcstride,
                                      groups=G, avg_pool_len=P,
                                      padding=padding, dilation=1)
        assert out.shape == ref.shape, (name, out.shape, ref.shape)
        err = float(jnp.max(jnp.abs(out - ref)))
        assert jnp.allclose(out, ref, atol=atol, rtol=rtol), (name, err)

    k1, k2 = jax.random.split(key)
    # Case 1: module-sized config (in=4, out=8, K=3, groups=2, pool=2), small L.
    cfg1 = (2, 4, 8, 3, 1, 1, 2, 2, 16)
    check("small_f32", cfg1, k1)
    check("small_bf16_mxu", cfg1, k1, use_bf16=True, atol=2e-2, rtol=2e-2)
    # Case 2: longer sequence -> multiple lane tiles, halos, partial last tile.
    cfg2 = (2, 16, 32, 5, 1, 1, 4, 4, 2048)
    check("tiled_f32", cfg2, k2)

    print("KERNEL_OK")
</pallas_src>

<mosaic_0001>
module attributes {stable_mosaic.version = 11 : i64} {
  func.func @_gdsconv_block_kernel(%arg0: i32, %arg1: i32, %arg2: memref<1x4x128xf32, #tpu.memory_space<vmem>>, %arg3: memref<1x4x256xf32, #tpu.memory_space<vmem>>, %arg4: memref<1x4x128xf32, #tpu.memory_space<vmem>>, %arg5: memref<4x3xf32, #tpu.memory_space<vmem>>, %arg6: memref<8x4xf32, #tpu.memory_space<vmem>>, %arg7: memref<8x1xf32, #tpu.memory_space<vmem>>, %arg8: memref<8x1xf32, #tpu.memory_space<vmem>>, %arg9: memref<256x128xf32, #tpu.memory_space<vmem>>, %arg10: memref<1x8x128xf32, #tpu.memory_space<vmem>>) attributes {dimension_semantics = [#tpu.dimension_semantics<parallel>, #tpu.dimension_semantics<parallel>], iteration_bounds = array<i64: 2, 1>, scalar_prefetch = 0 : i64, scratch_operands = 0 : i64, tpu.core_type = #tpu.core_type<tc>, window_params = [{transform_indices = @transform_0, window_bounds = array<i64: 1, 4, 128>}, {transform_indices = @transform_1, window_bounds = array<i64: 1, 4, 256>}, {transform_indices = @transform_2, window_bounds = array<i64: 1, 4, 128>}, {pipeline_mode = #tpu.pipeline_mode<synchronous>, transform_indices = @transform_3, window_bounds = array<i64: 4, 3>}, {pipeline_mode = #tpu.pipeline_mode<synchronous>, transform_indices = @transform_4, window_bounds = array<i64: 8, 4>}, {pipeline_mode = #tpu.pipeline_mode<synchronous>, transform_indices = @transform_5, window_bounds = array<i64: 8, 1>}, {pipeline_mode = #tpu.pipeline_mode<synchronous>, transform_indices = @transform_6, window_bounds = array<i64: 8, 1>}, {pipeline_mode = #tpu.pipeline_mode<synchronous>, transform_indices = @transform_7, window_bounds = array<i64: 256, 128>}, {transform_indices = @transform_8, window_bounds = array<i64: 1, 8, 128>}]} {
    %c0 = arith.constant 0 : index
    %c0_0 = arith.constant 0 : index
    %c0_1 = arith.constant 0 : index
    %0 = vector.load %arg2[%c0, %c0_0, %c0_1] : memref<1x4x128xf32, #tpu.memory_space<vmem>>, vector<1x4x128xf32>
    %1 = vector.shape_cast %0 : vector<1x4x128xf32> to vector<4x128xf32>
    %c0_2 = arith.constant 0 : index
    %c0_3 = arith.constant 0 : index
    %c0_4 = arith.constant 0 : index
    %2 = vector.load %arg3[%c0_2, %c0_3, %c0_4] : memref<1x4x256xf32, #tpu.memory_space<vmem>>, vector<1x4x256xf32>
    %3 = vector.shape_cast %2 : vector<1x4x256xf32> to vector<4x256xf32>
    %c0_5 = arith.constant 0 : index
    %c0_6 = arith.constant 0 : index
    %c0_7 = arith.constant 0 : index
    %4 = vector.load %arg4[%c0_5, %c0_6, %c0_7] : memref<1x4x128xf32, #tpu.memory_space<vmem>>, vector<1x4x128xf32>
    %5 = vector.shape_cast %4 : vector<1x4x128xf32> to vector<4x128xf32>
    %6 = tpu.concatenate %1, %3, %5 in 1 : vector<4x128xf32>, vector<4x256xf32>, vector<4x128xf32> -> vector<4x512xf32>
    %c256_i32 = arith.constant 256 : i32
    %7 = arith.muli %arg1, %c256_i32 : i32
    %c128_i32 = arith.constant 128 : i32
    %8 = arith.subi %7, %c128_i32 : i32
    %9 = tpu.iota {dimensions = array<i32: 1>} : vector<1x512xi32>
    %10 = vector.broadcast %8 : i32 to vector<1x512xi32>
    %11 = arith.addi %10, %9 : vector<1x512xi32>
    %c0_i32 = arith.constant 0 : i32
    %12 = vector.broadcast %c0_i32 : i32 to vector<1x512xi32>
    %13 = arith.cmpi sge, %11, %12 : vector<1x512xi32>
    %c16_i32 = arith.constant 16 : i32
    %14 = vector.broadcast %c16_i32 : i32 to vector<1x512xi32>
    %15 = arith.cmpi slt, %11, %14 : vector<1x512xi32>
    %16 = arith.andi %13, %15 : vector<1x512xi1>
    %cst = arith.constant 0.000000e+00 : f32
    %17 = vector.shape_cast %16 : vector<1x512xi1> to vector<1x512xi1>
    %18 = vector.broadcast %17 : vector<1x512xi1> to vector<4x512xi1>
    %19 = vector.broadcast %cst : f32 to vector<4x512xf32>
    %20 = arith.select %18, %6, %19 : vector<4x512xi1>, vector<4x512xf32>
    %c0_8 = arith.constant 0 : index
    %c0_9 = arith.constant 0 : index
    %21 = vector.load %arg5[%c0_8, %c0_9] : memref<4x3xf32, #tpu.memory_space<vmem>>, vector<4x3xf32>
    %cst_10 = arith.constant 0.000000e+00 : f32
    %22 = vector.broadcast %cst_10 : f32 to vector<4x256xf32>
    %23 = vector.extract_strided_slice %20 {offsets = [0, 126], sizes = [4, 256], strides = [1, 1]} : vector<4x512xf32> to vector<4x256xf32>
    %24 = vector.extract_strided_slice %21 {offsets = [0, 0], sizes = [4, 1], strides = [1, 1]} : vector<4x3xf32> to vector<4x1xf32>
    %25 = vector.broadcast %24 : vector<4x1xf32> to vector<4x256xf32>
    %26 = arith.mulf %25, %23 : vector<4x256xf32>
    %27 = arith.addf %22, %26 : vector<4x256xf32>
    %28 = vector.extract_strided_slice %20 {offsets = [0, 127], sizes = [4, 256], strides = [1, 1]} : vector<4x512xf32> to vector<4x256xf32>
    %29 = vector.extract_strided_slice %21 {offsets = [0, 1], sizes = [4, 1], strides = [1, 1]} : vector<4x3xf32> to vector<4x1xf32>
    %30 = vector.broadcast %29 : vector<4x1xf32> to vector<4x256xf32>
    %31 = arith.mulf %30, %28 : vector<4x256xf32>
    %32 = arith.addf %27, %31 : vector<4x256xf32>
    %33 = vector.extract_strided_slice %20 {offsets = [0, 128], sizes = [4, 256], strides = [1, 1]} : vector<4x512xf32> to vector<4x256xf32>
    %34 = vector.extract_strided_slice %21 {offsets = [0, 2], sizes = [4, 1], strides = [1, 1]} : vector<4x3xf32> to vector<4x1xf32>
    %35 = vector.broadcast %34 : vector<4x1xf32> to vector<4x256xf32>
    %36 = arith.mulf %35, %33 : vector<4x256xf32>
    %37 = arith.addf %32, %36 : vector<4x256xf32>
    %c0_11 = arith.constant 0 : index
    %c0_12 = arith.constant 0 : index
    %38 = vector.load %arg6[%c0_11, %c0_12] : memref<8x4xf32, #tpu.memory_space<vmem>>, vector<8x4xf32>
    %cst_13 = arith.constant dense<0.000000e+00> : vector<8x256xf32>
    %39 = tpu.matmul %38, %37, %cst_13 {dimension_numbers = #tpu.dot_dimension_numbers<[1], [0], [0], [1], [0, 0, 1, 1], [], []>} : vector<8x4xf32>, vector<4x256xf32>, vector<8x256xf32> -> vector<8x256xf32>
    %cst_14 = arith.constant 0.000000e+00 : f32
    %40 = vector.broadcast %cst_14 : f32 to vector<8x256xf32>
    %41 = arith.maximumf %39, %40 : vector<8x256xf32>
    %c0_15 = arith.constant 0 : index
    %c0_16 = arith.constant 0 : index
    %42 = vector.load %arg7[%c0_15, %c0_16] : memref<8x1xf32, #tpu.memory_space<vmem>>, vector<8x1xf32>
    %43 = vector.broadcast %42 : vector<8x1xf32> to vector<8x256xf32>
    %44 = arith.mulf %41, %43 : vector<8x256xf32>
    %c0_17 = arith.constant 0 : index
    %c0_18 = arith.constant 0 : index
    %45 = vector.load %arg8[%c0_17, %c0_18] : memref<8x1xf32, #tpu.memory_space<vmem>>, vector<8x1xf32>
    %46 = vector.broadcast %45 : vector<8x1xf32> to vector<8x256xf32>
    %47 = arith.addf %44, %46 : vector<8x256xf32>
    %c256_i32_19 = arith.constant 256 : i32
    %48 = arith.muli %arg1, %c256_i32_19 : i32
    %c1_i32 = arith.constant 1 : i32
    %49 = arith.subi %48, %c1_i32 : i32
    %50 = tpu.iota {dimensions = array<i32: 1>} : vector<1x256xi32>
    %51 = vector.broadcast %49 : i32 to vector<1x256xi32>
    %52 = arith.addi %51, %50 : vector<1x256xi32>
    %c0_i32_20 = arith.constant 0 : i32
    %53 = vector.broadcast %c0_i32_20 : i32 to vector<1x256xi32>
    %54 = arith.cmpi sge, %52, %53 : vector<1x256xi32>
    %c16_i32_21 = arith.constant 16 : i32
    %55 = vector.broadcast %c16_i32_21 : i32 to vector<1x256xi32>
    %56 = arith.cmpi slt, %52, %55 : vector<1x256xi32>
    %57 = arith.andi %54, %56 : vector<1x256xi1>
    %cst_22 = arith.constant 0.000000e+00 : f32
    %58 = vector.shape_cast %57 : vector<1x256xi1> to vector<1x256xi1>
    %59 = vector.broadcast %58 : vector<1x256xi1> to vector<8x256xi1>
    %60 = vector.broadcast %cst_22 : f32 to vector<8x256xf32>
    %61 = arith.select %59, %47, %60 : vector<8x256xi1>, vector<8x256xf32>
    %c0_23 = arith.constant 0 : index
    %c0_24 = arith.constant 0 : index
    %62 = vector.load %arg9[%c0_23, %c0_24] : memref<256x128xf32, #tpu.memory_space<vmem>>, vector<256x128xf32>
    %cst_25 = arith.constant dense<0.000000e+00> : vector<8x128xf32>
    %63 = tpu.matmul %61, %62, %cst_25 {dimension_numbers = #tpu.dot_dimension_numbers<[1], [0], [0], [1], [0, 0, 1, 1], [], []>} : vector<8x256xf32>, vector<256x128xf32>, vector<8x128xf32> -> vector<8x128xf32>
    %cst_26 = arith.constant 5.000000e-01 : f32
    %64 = vector.broadcast %cst_26 : f32 to vector<8x128xf32>
    %65 = arith.mulf %63, %64 : vector<8x128xf32>
    %c0_27 = arith.constant 0 : index
    %c0_28 = arith.constant 0 : index
    %c0_29 = arith.constant 0 : index
    %66 = vector.load %arg10[%c0_27, %c0_28, %c0_29] : memref<1x8x128xf32, #tpu.memory_space<vmem>>, vector<1x8x128xf32>
    %67 = vector.shape_cast %66 : vector<1x8x128xf32> to vector<8x128xf32>
    %68 = vector.shape_cast %65 : vector<8x128xf32> to vector<1x8x128xf32>
    tpu.vector_store %arg10[%c0_27, %c0_28, %c0_29], %68 {strides = array<i32>} : memref<1x8x128xf32, #tpu.memory_space<vmem>>, vector<1x8x128xf32>,
    return
  }
  func.func @transform_0(%arg0: i32, %arg1: i32) -> (i32, i32, i32) {
    %c2_i32 = arith.constant 2 : i32
    %0 = arith.muli %arg1, %c2_i32 : i32
    %c1_i32 = arith.constant 1 : i32
    %1 = arith.subi %0, %c1_i32 : i32
    %c0_i32 = arith.constant 0 : i32
    %2 = arith.minsi %1, %c0_i32 : i32
    %c0_i32_0 = arith.constant 0 : i32
    %3 = arith.maxsi %2, %c0_i32_0 : i32
    %c0_i32_1 = arith.constant 0 : i32
    %c0_i32_2 = arith.constant 0 : i32
    return %arg0, %c0_i32_1, %3 : i32, i32, i32
  }
  func.func @transform_1(%arg0: i32, %arg1: i32) -> (i32, i32, i32) {
    %c0_i32 = arith.constant 0 : i32
    %0 = arith.minsi %arg1, %c0_i32 : i32
    %c0_i32_0 = arith.constant 0 : i32
    %c0_i32_1 = arith.constant 0 : i32
    return %arg0, %c0_i32_0, %0 : i32, i32, i32
  }
  func.func @transform_2(%arg0: i32, %arg1: i32) -> (i32, i32, i32) {
    %c1_i32 = arith.constant 1 : i32
    %0 = arith.addi %arg1, %c1_i32 : i32
    %c2_i32 = arith.constant 2 : i32
    %1 = arith.muli %0, %c2_i32 : i32
    %c0_i32 = arith.constant 0 : i32
    %2 = arith.minsi %1, %c0_i32 : i32
    %c0_i32_0 = arith.constant 0 : i32
    %c0_i32_1 = arith.constant 0 : i32
    return %arg0, %c0_i32_0, %2 : i32, i32, i32
  }
  func.func @transform_3(%arg0: i32, %arg1: i32) -> (i32, i32) {
    %c0_i32 = arith.constant 0 : i32
    %c0_i32_0 = arith.constant 0 : i32
    %c0_i32_1 = arith.constant 0 : i32
    return %c0_i32, %c0_i32_0 : i32, i32
  }
  func.func @transform_4(%arg0: i32, %arg1: i32) -> (i32, i32) {
    %c0_i32 = arith.constant 0 : i32
    %c0_i32_0 = arith.constant 0 : i32
    %c0_i32_1 = arith.constant 0 : i32
    return %c0_i32, %c0_i32_0 : i32, i32
  }
  func.func @transform_5(%arg0: i32, %arg1: i32) -> (i32, i32) {
    %c0_i32 = arith.constant 0 : i32
    %c0_i32_0 = arith.constant 0 : i32
    %c0_i32_1 = arith.constant 0 : i32
    return %c0_i32, %c0_i32_0 : i32, i32
  }
  func.func @transform_6(%arg0: i32, %arg1: i32) -> (i32, i32) {
    %c0_i32 = arith.constant 0 : i32
    %c0_i32_0 = arith.constant 0 : i32
    %c0_i32_1 = arith.constant 0 : i32
    return %c0_i32, %c0_i32_0 : i32, i32
  }
  func.func @transform_7(%arg0: i32, %arg1: i32) -> (i32, i32) {
    %c0_i32 = arith.constant 0 : i32
    %c0_i32_0 = arith.constant 0 : i32
    %c0_i32_1 = arith.constant 0 : i32
    return %c0_i32, %c0_i32_0 : i32, i32
  }
  func.func @transform_8(%arg0: i32, %arg1: i32) -> (i32, i32, i32) {
    %c0_i32 = arith.constant 0 : i32
    %c0_i32_0 = arith.constant 0 : i32
    return %arg0, %c0_i32, %arg1 : i32, i32, i32
  }
}

</mosaic_0001>

<bundles_post_ra>
// kernel: tpu_custom_call.1
= control target key start
LH: loop header
LB: loop body
LE: loop exit
PB: predicated region body
PF: predicated region fallthrough
CT: control target
= control target key end

     0   :  { %13 = vsyncpa [#allocation3], 0  ;;  %s1443_s0 = inlined_call_operand.vmem [shape: f32[2,4,16], index: 0, kind: input, shape index: {}]   ;;  %s1444_s1 = inlined_call_operand.vmem [shape: f32[2,4,16], index: 1, kind: input, shape index: {}]   ;;  %s1445_s2 = inlined_call_operand.vmem [shape: f32[2,4,16], index: 2, kind: input, shape index: {}]   ;;  %s1446_s3 = inlined_call_operand.vmem [shape: f32[4,3], index: 3, kind: input, shape index: {}]   ;;  %s1447_s4 = inlined_call_operand.vmem [shape: f32[8,4], index: 4, kind: input, shape index: {}]   ;;  %s1448_s5 = inlined_call_operand.vmem [shape: f32[8,1], index: 5, kind: input, shape index: {}]   ;;  %s1449_s6 = inlined_call_operand.vmem [shape: f32[8,1], index: 6, kind: input, shape index: {}]   ;;  %s1450_s7 = inlined_call_operand.hbm [shape: f32[256,128], index: 7, kind: input, shape index: {}]   ;;  %s1451_s8 = inlined_call_operand.hbm [shape: f32[2,8,9], index: 8, kind: output, shape index: {}]  }
   0x1   :  { %14 = vsyncpa [#allocation4], 0 }
   0x2   :  { %16 = vsyncpa [#allocation4 + $0x1], 0  ;;  %s1277_s2 = smov 0   ;;  %s1279_s26 = smov 0  }
   0x3   :  { %s1281_s27 = smov 0   ;;  %s1283_s28 = smov 0  }
   0x4   :  { %s1285_s29 = smov 0   ;;  %s1287_s30 = smov 0  }
   0x5 LB: > { %s945_s9 = sadd.s32 4294967295, %s1219_s30   ;;  %s946_s10 = sadd.s32 4294967294, %s1219_s30   ;;  %s1219_s30 = sphi %s1287_s30, %s22_s30   ;;  %s1215_s29 = sphi %s1285_s29, %s1469_s29   ;;  %s1211_s28 = sphi %s1283_s28, %s1468_s28   ;;  %s1207_s27 = sphi %s1281_s27, %s1467_s27   ;;  %s1203_s26 = sphi %s1279_s26, %s1466_s26   ;;  %s1199_s2 = sphi %s1277_s2, %s1465_s2  }
   0x6   : > { %s34_s11 = sadd.s32 1, %s1215_s29  ;;  %s256_s12 = sadd.s32 1, %s1207_s27 }
   0x7   : > { %p36_p0 = scmp.ge.s32.totalorder %s34_s11, 2  ;;  %p266_p1 = scmp.ne.s32.totalorder %s1207_s27, %s1203_s26 }
   0x8   : > { %p267_p2 = scmp.eq.s32.totalorder %s945_s9, 1  ;;  %p272_p3 = scmp.ne.s32.totalorder %s1203_s26, %s1199_s2 }
   0x9   : > { %s1471_s11 = smov (%p36_p0, %s34_s11), 0  ;;  %p273_p5 = scmp.eq.s32.totalorder %s946_s10, 1 }
   0xa   : > { %p1317_p4 = por %p267_p2, %p266_p1  ;;  %s251_s14 = ssub.s32 %s1215_s29, %s1471_s11 }
   0xb   : > { %p947_p6 = scmp.ge.s32.totalorder %s1219_s30, 1  ;;  %p254_p7 = scmp.eq.s32.totalorder %s251_s14, 0 }
   0xc   : > { %s1456_s13 = scalar_select %p1317_p4, 1, 0 }
   0xd   : > { %p1324_p8 = por %p273_p5, %p272_p3  ;;  %p280_p9 = scmp.lt.s32.totalorder %s1219_s30, 3 }
   0xe   : > { %s1330_s16 = scalar_select %p254_p7, %s1207_s27, %s256_s12  }
   0xf   : > { %s1457_s15 = scalar_select %p1324_p8, 1, 0 }
  0x10   : > { %p1332_p10 = pnand %p947_p6, %p280_p9  ;;  %p1336_p11 = scmp.eq.s32.totalorder %s945_s9, 0 }
  0x11   : > { %s1221_s19 = smov [#allocation2]   ;;  %s1109_s0 = scalar_lea.hbm %s1450_s7, 4096 }
  0x12   : > { %s1458_s17 = scalar_select %p1332_p10, 1, 0 }
  0x13   : > { %s1459_s18 = scalar_select %p1336_p11, 1, 0 }
  0x14   : > { %p1036_p12 = pneg %p1332_p10  ;;  %s304_s20 = sshll.u32 %s1221_s19, 4  ;;  %s305_s20 = int_to_ptr.vmem [resolvable:$true] %s304_s20 }
  0x15   : > { %p1110_p0 = scmp.ne.s32.totalorder %s1450_s7, %s1109_s0  ;;  %p1116_p5 = scmp.lt.u32.totalorder %s1109_s0, %s1450_s7 }
  0x16   : > { %p1344_p13 = pnand %p1336_p11, %p1036_p12 }
  0x18   : > { %p1111_p1 = pneg %p1344_p13 }
  0x1a   : > { %p1112_p2 = pnand %p1111_p1, %p1110_p0 }
  0x1c   : > { %p1113_p3 = pneg %p1112_p2 }
  0x1e   : > { %p1118_p6 = pnand %p1116_p5, %p1113_p3 }
  0x20   : > { %1121 = shalt.err (!%p1118_p6)
}
  0x21   : > { %s1122_s12 = scalar_lea.vmem %s305_s20, 4096  ;;  %p1130_p8 = scmp.lt.s32.totalorder %s305_s20, %s305_s20 }
  0x22   : > { %p1123_p7 = scmp.ne.s32.totalorder %s305_s20, %s1122_s12  ;;  %p1131_p4 = scmp.lt.s32.totalorder %s1122_s12, %s1122_s12 }
  0x24   : > { %p1125_p9 = pnand %p1123_p7, %p1111_p1  ;;  %p1132_p11 = por %p1131_p4, %p1130_p8 }
  0x26   : > { %p1126_p12 = pneg %p1125_p9 }
  0x28   : > { %p1133_p10 = pnand %p1132_p11, %p1126_p12 }
  0x2a   : > { %1136 = shalt.err (!%p1133_p10)
}
  0x2b   : > { %s1222_s14 = smov 128   ;;  %s1223_s19 = smov 8  }
  0x2c   : > { %1039 = dma.hbm_to_vmem [thread:$0]  (!%p1344_p13), %s1450_s7, 4096, %s305_s20, [#allocation3], %s1222_s14, %s1222_s14, %s1223_s19  }
  0x2d   : > { %p1461_p0 = scmp.ne.s32.totalorder %s1458_s17, 0 }
  0x2e   : > { %p1462_p2 = scmp.ne.s32.totalorder (!%p1461_p0), %s1459_s18, 0 }
  0x2f   : > { %380 = sbr.rel (%p1461_p0) target bundleno = 883 (0x373), region = 52 }
  0x36   : > { %1190 = dma.done.wait (%p1462_p2), [#allocation3], 4096  }
  0x37   : > { %1192 = vsyncadd (%p1462_p2), [#allocation3], 4294963200  ;;  %v1224_v0 = vmov 1   ;;  %v1225_v1 = vmov 0   ;;  %v529_v2 = vld [vmem:[%s1446_s3] sm:$0xf]  ;;  %v503_v4 = vlaneseq }
  0x38   : > { %1105 = vset.pattern.permute.xlu0 %v1224_v0  ;;  %1107 = vset.pattern.permute.xlu1 %v1225_v1  ;;  %v1226_v3 = vmov 2   ;;  %p469_p4 = scmp.lt.s32.totalorder %s1211_s28, 1  ;;  %s1227_s9 = smov 127   ;;  %vm557_vm1 = vcmask 1039360   ;;  %v1229_v21 = vmov 0.0   ;;  %vm578_vm2 = vcmask 1031168  }
  0x39   : > { %542 = vperm.xlu0 %1105, %v529_v2   ;;  %532 = vperm.xlu1 %1107, %v529_v2   ;;  %v1374_v5 = vand.u32 127, %v503_v4  ;;  %s1228_s10 = smov 126   ;;  %s1230_s12 = smov 2   ;;  %v689_v34 = vld [vmem:[%s1449_s6] sm:$0xff]  ;;  %v730_v37 = vld [vmem:[#allocation2 + $0x88] sm:$0xff]  ;;  %v731_v41 = vld [vmem:[#allocation2 + $0x90] sm:$0xff] }
  0x3a   : > { %s470_s17 = scalar_select %p469_p4, %s1211_s28, 1  ;;  %672 = vmatprep.mubr.f32.mxu0 %v1229_v21  ;;  %809 = vmatprep.mubr.f32.mxu1 %v1229_v21  ;;  %v681_v35 = vld [vmem:[%s1448_s5] sm:$0xff]  ;;  %v714_v40 = vld [vmem:[#allocation2 + $0x8] sm:$0xff]  ;;  %v732_v43 = vld [vmem:[#allocation2 + $0x98] sm:$0xff]  ;;  %vm596_vm3 = vcmask 15360   ;;  %vm603_vm4 = vcmask 1043456  }
  0x3b   : > { %v505_v6 = vadd.s32 128, %v1374_v5  ;;  %v729_v36 = vld [vmem:[#allocation2 + $0x80] sm:$0xff]  ;;  %v715_v44 = vld [vmem:[#allocation2 + $0x10] sm:$0xff]  ;;  %v716_v45 = vld [vmem:[#allocation2 + $0x18] sm:$0xff]  ;;  %v1002_v46 = vpack.c.bf16 %v732_v43, %v731_v41  ;;  %vm599_vm5 = vcmask 31744   ;;  %s960_s20 = sshll.u32 %s1211_s28, 7 }
  0x3c   : > { %s954_s18 = sshll.u32 %s470_s17, 2  ;;  %v998_v38 = vpack.c.bf16 %v730_v37, %v729_v36  ;;  %v713_v39 = vld [vmem:[#allocation2] sm:$0xff]  ;;  %v734_v48 = vld [vmem:[#allocation2 + $0xa8] sm:$0xff]  ;;  %v1004_v49 = vpack.c.bf16 %v716_v45, %v715_v44  ;;  %v735_v53 = vld [vmem:[#allocation2 + $0xb0] sm:$0xff]  ;;  %s442_s17 = sand.u32 1, %s1203_s26  }
  0x3d   : > { %1106 = vset.pattern.permute.xlu0 %v1226_v3  ;;  %v509_v7 = vadd.s32 4294967168, %v505_v6  ;;  %s475_s25 = scalar_lea.vmem %s1444_s1, %s954_s18  ;;  %v1000_v42 = vpack.c.bf16 %v714_v40, %v713_v39  ;;  %v733_v47 = vld [vmem:[#allocation2 + $0xa0] sm:$0xff]  ;;  %v718_v52 = vld [vmem:[#allocation2 + $0x28] sm:$0xff]  ;;  %v736_v54 = vld [vmem:[#allocation2 + $0xb8] sm:$0xff]  ;;  %s952_s18 = sshll.u32 %s442_s17, 3 }
  0x3e   : > { %567 = vperm.xlu0 %1106, %v529_v2   ;;  %v497_v8 = vld [vmem:[%s475_s25] sm:$0xff]  ;;  %999 = vmatprep.subr.bf16.mxu1 %v998_v38  ;;  %v1006_v50 = vpack.c.bf16 %v734_v48, %v733_v47  ;;  %v1010_v56 = vpack.c.bf16 %v736_v54, %v735_v53  ;;  %v719_v57 = vld [vmem:[#allocation2 + $0x30] sm:$0xff]  ;;  %v720_v58 = vld [vmem:[#allocation2 + $0x38] sm:$0xff]  ;;  %s444_s24 = scalar_lea.vmem [#allocation5], %s952_s18  ;;  %s818_s14 = scalar_lea.sflag [#allocation4], %s442_s17 }
  0x3f   : > { %vm515_vm0 = vcmp.lt.s32.totalorder %v509_v7, 16  ;;  %1001 = vmatpush3.bf16.msra.mxu1 %v1000_v42  ;;  %v717_v51 = vld [vmem:[#allocation2 + $0x20] sm:$0xff]  ;;  %v738_v60 = vld [vmem:[#allocation2 + $0xc8] sm:$0xff]  ;;  %v1012_v61 = vpack.c.bf16 %v720_v58, %v719_v57  ;;  %v740_v2 = vld [vmem:[#allocation2 + $0xd8] sm:$0xff]  ;;  %s832_s25 = sshll.u32 %s444_s24, 4  ;;  %p1463_p10 = scmp.ne.s32.totalorder %s1456_s13, 0  ;;  %s1398_s25 = int_to_ptr.vmem [resolvable:$true] %s832_s25 }
  0x40   : > { %v527_v9 = vsel %vm515_vm0, %v497_v8, 0.0  ;;  %1003 = vmatprep.subr.bf16.mxu1 %v1002_v46  ;;  %v1008_v55 = vpack.c.bf16 %v718_v52, %v717_v51  ;;  %v737_v59 = vld [vmem:[#allocation2 + $0xc0] sm:$0xff]  ;;  %v722_v0 = vld [vmem:[#allocation2 + $0x48] sm:$0xff]  ;;  %v723_v6 = vld [vmem:[#allocation2 + $0x50] sm:$0xff]  ;;  %s1137_s19 = scalar_lea.vmem %s1398_s25, 128  ;;  %s1231_s28 = smov [#allocation5]  }
  0x41   : > { %v1014_v62 = vpack.c.bf16 %v738_v60, %v737_v59  ;;  %v721_v63 = vld [vmem:[#allocation2 + $0x40] sm:$0xff]  ;;  %v724_v7 = vld [vmem:[#allocation2 + $0x58] sm:$0xff]  ;;  %v743_v21 = vld [vmem:[#allocation2 + $0xf0] sm:$0xff]  ;;  %p1138_p8 = scmp.ne.s32.totalorder %s1398_s25, %s1137_s19  ;;  %s1141_s22 = sshll.u32 %s1231_s28, 4  ;;  %s1142_s22 = int_to_ptr.vmem [resolvable:$false] %s1141_s22 }
  0x42   : > { %1108 = vset.pattern.permute.xlu0 %v1225_v1  ;;  %v739_v1 = vld [vmem:[#allocation2 + $0xd0] sm:$0xff]  ;;  %v1016_v3 = vpack.c.bf16 %v722_v0, %v721_v63  ;;  %v741_v8 = vld [vmem:[#allocation2 + $0xe0] sm:$0xff]  ;;  %s1143_s23 = scalar_lea.vmem %s1142_s22, 256  ;;  %p1144_p1 = scmp.lt.s32.totalorder %s1398_s25, %s1142_s22 }
  0x43   : > { %1005 = vmatpush3.bf16.msra.mxu1 %v1004_v49  ;;  %v1018_v4 = vpack.c.bf16 %v740_v2, %v739_v1  ;;  %p1139_p11 = pnand %p1138_p8, %p1463_p10  ;;  %p1145_p3 = scmp.lt.s32.totalorder %s1143_s23, %s1137_s19 }
  0x44   : > { %1007 = vmatprep.subr.bf16.mxu1 %v1006_v50 }
  0x45   : > { %p1140_p13 = pneg %p1139_p11  ;;  %p1146_p5 = por %p1145_p3, %p1144_p1 }
  0x47   : > { %1009 = vmatpush3.bf16.msra.mxu1 %v1008_v55  ;;  %p1147_p6 = pnand %p1146_p5, %p1140_p13 }
  0x48   : > { %1011 = vmatprep.subr.bf16.mxu1 %v1010_v56 }
  0x4b   : > { %1013 = vmatpush3.bf16.msra.mxu1 %v1012_v61 }
  0x4c   : > { %1015 = vmatprep.subr.bf16.mxu1 %v1014_v62 }
  0x4f   : > { %1017 = vmatpush3.bf16.msra.mxu1 %v1016_v3 }
  0x50   : > { %1019 = vmatprep.subr.bf16.mxu1 %v1018_v4 }
  0xb8   : > { %v543_v10 = vpop.permute.xlu0 %542  ;;  %v533_v16 = vpop.permute.xlu1 %532 }
  0xb9   : > { %v545_v11 = vmul.f32 0.0, %v543_v10  ;;  %v546_v12 = vmul.f32 %v543_v10, %v527_v9  ;;  %v535_v19 = vmul.f32 0.0, %v533_v16  ;;  %v536_v25 = vmul.f32 %v533_v16, %v527_v9  ;;  %v586_v16 = vld [vmem:[%s1447_s4] sm:$0xff] }
  0xba   : > { %v1020_v10 = vpack.c.bf16 %v724_v7, %v723_v6 }
  0xbb   : > { %551 = vrot.lane.b32.xlu0 %v545_v11, %s1227_s9  ;;  %553 = vrot.lane.b32.xlu1 %v546_v12, %s1227_s9 }
  0xbc   : > { %1021 = vmatpush3.bf16.msra.mxu1 %v1020_v10 }
  0xbd   : > { %v568_v13 = vpop.permute.xlu0 %567 }
  0xbe   : > { %v571_v14 = vmul.f32 0.0, %v568_v13  ;;  %v570_v15 = vmul.f32 %v568_v13, %v527_v9  ;;  %v742_v9 = vld [vmem:[#allocation2 + $0xe8] sm:$0xff] }
  0xbf   : > { %555 = vrot.lane.b32.xlu1 %v545_v11, %s1227_s9  ;;  %v1022_v11 = vpack.c.bf16 %v742_v9, %v741_v8 }
  0xc0   : > { %576 = vrot.lane.b32.xlu0 %v571_v14, %s1228_s10 }
  0xc1   : > { %1023 = vmatprep.subr.bf16.mxu1 %v1022_v11 }
  0xc3   : > { %574 = vrot.lane.b32.xlu1 %v570_v15, %s1228_s10 }
 0x12d   : > { %v554_v17 = vpop.permute.xlu1 %553  ;;  %v552_v18 = vpop.permute.xlu0 %551 }
 0x12e   : > { %v558_v29 = vsel %vm557_vm1, %v552_v18, %v554_v17  ;;  %v725_v18 = vld [vmem:[#allocation2 + $0x60] sm:$0xff] }
 0x12f   : > { %v563_v32 = vadd.f32 %v558_v29, %v535_v19 }
 0x131   : > { %v556_v20 = vpop.permute.xlu1 %555 }
 0x132   : > { %v559_v22 = vsel %vm557_vm1, %v554_v17, %v556_v20  ;;  %v565_v23 = vadd.f32 %v556_v20, %v535_v19  ;;  %v577_v24 = vpop.permute.xlu0 %576  ;;  %v726_v19 = vld [vmem:[#allocation2 + $0x68] sm:$0xff] }
 0x133   : > { %v564_v27 = vadd.f32 %v559_v22, %v536_v25  ;;  %v1024_v20 = vpack.c.bf16 %v726_v19, %v725_v18  ;;  %v744_v22 = vld [vmem:[#allocation2 + $0xf8] sm:$0xff] }
 0x134   : > { %v585_v26 = vadd.f32 %v577_v24, %v565_v23  ;;  %v1026_v23 = vpack.c.bf16 %v744_v22, %v743_v21  ;;  %v728_v25 = vld [vmem:[#allocation2 + $0x78] sm:$0xff] }
 0x135   : > { %v575_v28 = vpop.permute.xlu1 %574  ;;  %1025 = vmatpush3.bf16.msra.mxu1 %v1024_v20 }
 0x136   : > { %v579_v30 = vsel %vm578_vm2, %v575_v28, %v577_v24  ;;  %594 = vrot.lane.b32.xlu0 %v585_v26, %s1230_s12  ;;  %v583_v33 = vadd.f32 %v575_v28, %v563_v32  ;;  %v727_v24 = vld [vmem:[#allocation2 + $0x70] sm:$0xff]  ;;  %1027 = vmatprep.subr.bf16.mxu1 %v1026_v23 }
 0x137   : > { %v584_v31 = vadd.f32 %v579_v30, %v564_v27  ;;  %v1028_v26 = vpack.c.bf16 %v728_v25, %v727_v24  ;;  %v699_v27 = vadd.s32 4294967295, %v1374_v5 }
 0x139   : > { %592 = vrot.lane.b32.xlu1 %v584_v31, %s1230_s12  ;;  %1029 = vmatpush3.bf16.msra.mxu1 %v1028_v26  ;;  %vm701_vm6 = vcmp.ge.s32.totalorder %v699_v27, 0  ;;  %vm703_vm7 = vcmp.lt.s32.totalorder %v699_v27, 16 }
 0x13a   : > { %684 = vperm.xlu0 %1108, %v681_v35   ;;  %vm705_vm8 = vmand %vm701_vm6, %vm703_vm7 }
 0x13d   : > { %590 = vrot.lane.b32.xlu1 %v583_v33, %s1230_s12  ;;  %s1396_s12 = scalar_lea.hbm %s1451_s8, %s960_s20 }
 0x141   : > { %692 = vperm.xlu1 %1107, %v689_v34  }
 0x1a8   : > { %v595_v12 = vpop.permute.xlu0 %594 }
 0x1ab   : > { %v593_v13 = vpop.permute.xlu1 %592 }
 0x1ac   : > { %v598_v14 = vsel %vm596_vm3, %v593_v13, %v595_v12 }
 0x1ad   : > { %955 = vmatprep.subr.msk.mxu0 %vm603_vm4, %v598_v14 }
 0x1af   : > { %v591_v15 = vpop.permute.xlu1 %590 }
 0x1b0   : > { %v597_v17 = vsel %vm596_vm3, %v591_v15, %v593_v13 }
 0x1b1   : > { %956 = vmatpush1.msk.msra.mxu0 %vm603_vm4, %v597_v17 }
 0x1b2   : > { %957 = vmatmul.mubr.msk.f32.vlgmr.msra.gmra.mrb[0].mxu0 %vm599_vm5, %v586_v16 }
 0x1b9   : > { %v685_v29 = vpop.permute.xlu0 %684 }
 0x1c0   : > { %v693_v33 = vpop.permute.xlu1 %692 }
 0x285   : > { %v674_v28 = vpop.f32.mrb[0].mxu0 }
 0x286   : > { %v679_v30 = vmax.f32 %v674_v28, 0.0  ;;  %v676_v31 = vpop.f32.mrb[1].mxu0 }
 0x288   : > { %v687_v32 = vmul.f32 %v685_v29, %v679_v30 }
 0x28a   : > { %v695_v34 = vadd.f32 %v693_v33, %v687_v32 }
 0x28c   : > { %958 = vmatmul.mubr.msk.f32.vlgmr.msra.gmra.mrb[0].mxu1 %vm705_vm8, %v695_v34 }
 0x35f   : > { %v995_v35 = vpop.f32.mrb[0].mxu1 }
 0x360   : > { %v996_v36 = vpop.f32.mrb[1].mxu1 }
 0x361   : > { %v997_v5 = vadd.f32 %v996_v36, %v995_v35 }
 0x363   : > { %v815_v37 = vmul.f32 0.5, %v997_v5 }
 0x365   : > { %816 = vst [vmem:[%s444_s24] sm:$0xff] %v815_v37 }
 0x366   : > { %1150 = shalt.err (!%p1147_p6)
}
 0x367   : > { %s1151_s21 = scalar_lea.hbm %s1396_s12, 128  ;;  %s1155_s18 = scalar_lea.hbm %s1451_s8, 256 }
 0x368   : > { %p1152_p7 = scmp.ne.s32.totalorder %s1396_s12, %s1151_s21  ;;  %p1156_p0 = scmp.lt.u32.totalorder %s1396_s12, %s1451_s8 }
 0x369   : > { %p1157_p2 = scmp.lt.u32.totalorder %s1155_s18, %s1151_s21  ;;  %p1159_p8 = scmp.lt.u32.totalorder %s1151_s21, %s1396_s12 }
 0x36a   : > { %p1153_p9 = pnand %p1152_p7, %p1463_p10 }
 0x36b   : > { %p1158_p4 = por %p1157_p2, %p1156_p0 }
 0x36c   : > { %p1154_p12 = pneg %p1153_p9 }
 0x36d   : > { %p1160_p11 = por %p1159_p8, %p1158_p4 }
 0x36f   : > { %p1161_p13 = pnand %p1160_p11, %p1154_p12 }
 0x371   : > { %1164 = shalt.err (!%p1161_p13)
}
 0x372   : > { %1034 = dma.vmem_to_hbm [thread:$0]  (%p1463_p10), %s1398_s25, 128, %s1396_s12, %s818_s14  }
 0x373 PF: > { %p1046_p1 = scmp.ge.s32.totalorder %s1219_s30, 2  ;;  %s844_s9 = sand.u32 1, %s1199_s2  }
 0x374   : > { %p1464_p3 = scmp.ne.s32.totalorder %s1457_s15, 0  ;;  %s845_s10 = scalar_lea.sflag [#allocation4], %s844_s9 }
 0x376   : > { %p1041_p5 = pnand %p1046_p1, %p1464_p3 }
 0x378   : > { %1194 = dma.done.wait (!%p1041_p5), %s845_s10, 128  }
 0x379   : > { %1196 = vsyncadd (!%p1041_p5), %s845_s10, 4294967168  ;;  %s22_s30 = sadd.s32 1, %s1219_s30   ;;  %s1465_s2 = smov %s1203_s26 }
 0x37a   : > { %p19_p6 = scmp.ge.s32.totalorder %s22_s30, 4   ;;  %s1466_s26 = smov %s1207_s27 }
 0x37b   : > { %s1467_s27 = smov %s1330_s16  ;;  %s1468_s28 = smov %s1215_s29 }
 0x37c   : > { %s1469_s29 = smov %s1471_s11  ;;  %21 = sbr.rel (!%p19_p6) target bundleno = 5 (0x5), region = 98 }
 0x383   :  { %850 = vsyncpa [#allocation3], 1 }
 0x384   :  { %852 = vsyncpa [#allocation3 + $0x1], 1 }
 0x385   :  { %853 = vsyncpa [#allocation4], 1 }
 0x386   :  { %855 = vsyncpa [#allocation4 + $0x1], 1 }

</bundles_post_ra>
